<compile_context>
chip_gen: v7x
topology: tpu7x:2x2x1
jax: 0.10.0
libtpu: 0.0.40
codegen_flags: <defaults>
</compile_context>

<pallas_src>
import functools

import jax
import jax.numpy as jnp
from jax import lax
from jax.experimental import pallas as pl
from jax.experimental.pallas import tpu as pltpu

BN_EPS = 1e-5          # nn.BatchNorm1d default eps
NORM_EPS = 1e-12       # F.normalize default eps
HIDDEN_DIMS = (32, 16, 8)

_SINGLE_BLOCK_MAX_ROWS = 4096   # whole batch as one x block up to here
_DEFAULT_BLOCK_ROWS = 2048      # x row-tile size above that


def _vmem_limit_bytes():
    """Per-generation scoped-VMEM budget (<=~48MiB on v7x, ~112MiB on v5e/v6e)."""
    mib = 1024 * 1024
    try:
        cap = pltpu.get_tpu_info().vmem_capacity_bytes
    except Exception:   # older jax / no query available: assume smallest (v7x)
        cap = 64 * mib
    return int(max(32 * mib, min(cap - 16 * mib, 112 * mib)))


def _eye(n):
    """n x n identity built from iotas (no dense constants inside the kernel)."""
    r = lax.broadcasted_iota(jnp.int32, (n, n), 0)
    c = lax.broadcasted_iota(jnp.int32, (n, n), 1)
    return (r == c).astype(jnp.float32)


def _to_feature_major(y_rows):
    """(N, F) -> (F, N) via an FxF identity matmul on the MXU (exact)."""
    f = y_rows.shape[1]
    return lax.dot_general(_eye(f), y_rows, (((1,), (1,)), ((), ())),
                           preferred_element_type=jnp.float32)


def _to_rows(h_cols):
    """(F, N) -> (N, F) via an FxF identity matmul on the MXU (exact)."""
    f = h_cols.shape[0]
    return lax.dot_general(h_cols, _eye(f), (((0,), (0,)), ((), ())),
                           preferred_element_type=jnp.float32)


def _bn_relu(y, gamma, beta, mask, inv_n):
    """Feature-major (F, N): BatchNorm1d (batch stats, two-pass var) + ReLU."""
    mean = jnp.sum(y, axis=1, keepdims=True) * inv_n             # (F, 1)
    cent = y - mean
    cm = cent if mask is None else cent * mask
    var = jnp.sum(cm * cm, axis=1, keepdims=True) * inv_n        # (F, 1)
    scale = gamma * lax.rsqrt(var + BN_EPS)
    h = jnp.maximum(cent * scale + beta, 0.0)
    return h if mask is None else h * mask                       # zero pad cols


def _final_bn_normalize(y, mask, inv_n):
    """Feature-major (feat, N): BatchNorm1d(affine=False) + F.normalize(dim=1)."""
    mean = jnp.sum(y, axis=1, keepdims=True) * inv_n
    cent = y - mean
    cm = cent if mask is None else cent * mask
    var = jnp.sum(cm * cm, axis=1, keepdims=True) * inv_n
    yb = cent * lax.rsqrt(var + BN_EPS)
    ss = jnp.sum(yb * yb, axis=0, keepdims=True)                 # (1, N)
    return yb * lax.rsqrt(jnp.maximum(ss, NORM_EPS * NORM_EPS))


def _ingest_tile(x_ref, w1_ref, buf_ref, t_steps):
    """Linear-1 on the current batch tile -> pre-BN rows into the resident buffer.

    The Linear bias is intentionally dropped: bias followed by batch-statistics
    BatchNorm cancels exactly, and dropping it keeps zero-padded batch rows
    exactly zero after the matmul."""
    y1 = lax.dot_general(x_ref[...], w1_ref[...], (((1,), (1,)), ((), ())),
                         preferred_element_type=jnp.float32)      # (tile, 32)
    if t_steps == 1:
        buf_ref[...] = y1
    else:
        tile = x_ref.shape[0]
        row0 = pl.multiple_of(pl.program_id(0) * tile, tile)
        buf_ref[pl.ds(row0, tile), :] = y1


def _chain(y1_rows, g1, be1, w2, g2, be2, w3, g3, be3, w4, mask, inv_n):
    """Whole-batch BN/ReLU/Linear chain in feature-major (lane-dense) layout."""
    h1 = _bn_relu(_to_feature_major(y1_rows), g1, be1, mask, inv_n)     # (32, N)
    h2 = _bn_relu(jnp.dot(w2, h1, preferred_element_type=jnp.float32),
                  g2, be2, mask, inv_n)                                 # (16, N)
    h3 = _bn_relu(jnp.dot(w3, h2, preferred_element_type=jnp.float32),
                  g3, be3, mask, inv_n)                                 # (8, N)
    z = _final_bn_normalize(
        jnp.dot(w4, h3, preferred_element_type=jnp.float32), mask, inv_n)
    return h1, h2, h3, z


def _make_mask(n_true, n_pad):
    if n_true == n_pad:
        return None
    lane = lax.broadcasted_iota(jnp.int32, (1, n_pad), 1)
    return (lane < n_true).astype(jnp.float32)


def _full_kernel(n_true, t_steps,
                 x_ref, w1_ref, g1_ref, be1_ref, w2_ref, g2_ref, be2_ref,
                 w3_ref, g3_ref, be3_ref, w4_ref,
                 l1_ref, l2_ref, l3_ref, z_ref):
    # Every grid step: stream this x tile through Linear-1 into the resident
    # layer-1 output buffer (acts as the pre-BN accumulation slab).
    _ingest_tile(x_ref, w1_ref, l1_ref, t_steps)

    # Last grid step: exact whole-batch BN statistics + the rest of the net,
    # then overwrite the outputs in PyTorch row layout.
    def _finish():
        n_pad = l1_ref.shape[0]
        inv_n = jnp.float32(1.0 / n_true)
        mask = _make_mask(n_true, n_pad)
        h1, h2, h3, z = _chain(l1_ref[...], g1_ref[...], be1_ref[...],
                               w2_ref[...], g2_ref[...], be2_ref[...],
                               w3_ref[...], g3_ref[...], be3_ref[...],
                               w4_ref[...], mask, inv_n)
        l1_ref[...] = _to_rows(h1)
        l2_ref[...] = _to_rows(h2)
        l3_ref[...] = _to_rows(h3)
        z_ref[...] = _to_rows(z)

    if t_steps == 1:
        _finish()
    else:
        pl.when(pl.program_id(0) == t_steps - 1)(_finish)


def _z_only_kernel(n_true, t_steps,
                   x_ref, w1_ref, g1_ref, be1_ref, w2_ref, g2_ref, be2_ref,
                   w3_ref, g3_ref, be3_ref, w4_ref,
                   z_ref, y1_buf):
    _ingest_tile(x_ref, w1_ref, y1_buf, t_steps)

    def _finish():
        n_pad = y1_buf.shape[0]
        inv_n = jnp.float32(1.0 / n_true)
        mask = _make_mask(n_true, n_pad)
        _, _, _, z = _chain(y1_buf[...], g1_ref[...], be1_ref[...],
                            w2_ref[...], g2_ref[...], be2_ref[...],
                            w3_ref[...], g3_ref[...], be3_ref[...],
                            w4_ref[...], mask, inv_n)
        z_ref[...] = _to_rows(z)

    if t_steps == 1:
        _finish()
    else:
        pl.when(pl.program_id(0) == t_steps - 1)(_finish)


def init_params(input_dim, feature_dim, key):
    """Kaiming-normal Linear weights ((out, in) convention), zero biases,
    BN gamma=1 / beta=0.  gamma/beta stored as (out, 1) columns for the
    kernel's feature-major broadcast.  Biases are kept only for API parity:
    the kernel never reads them (they cancel under batch-stat BatchNorm)."""
    dims = (input_dim,) + HIDDEN_DIMS + (feature_dim,)
    params = {}
    keys = jax.random.split(key, len(dims) - 1)
    for i, (fan_in, fan_out) in enumerate(zip(dims[:-1], dims[1:]), start=1):
        std = (2.0 / fan_in) ** 0.5
        params[f"w{i}"] = std * jax.random.normal(
            keys[i - 1], (fan_out, fan_in), dtype=jnp.float32)
        params[f"b{i}"] = jnp.zeros((fan_out,), dtype=jnp.float32)
        if i <= 3:  # the final BatchNorm has affine=False
            params[f"g{i}"] = jnp.ones((fan_out, 1), dtype=jnp.float32)
            params[f"be{i}"] = jnp.zeros((fan_out, 1), dtype=jnp.float32)
    return params


def _whole_spec(arr):
    zero = (0,) * arr.ndim
    return pl.BlockSpec(arr.shape, lambda t, _z=zero: _z)


@functools.partial(jax.jit, static_argnames=("feature_dim",
                                             "return_intermediates",
                                             "block_rows"))
def modified_network_forward(x, params, feature_dim, return_intermediates=True,
                             block_rows=None):
    n, d_in = x.shape
    x = x.astype(jnp.float32)

    # Batch tiling: single block for small batches (no padding), row tiles
    # otherwise (keeps x out of the VMEM ceiling and double-buffers its DMA).
    if block_rows is None:
        block_rows = n if n <= _SINGLE_BLOCK_MAX_ROWS else _DEFAULT_BLOCK_ROWS
    block_rows = max(8, min(int(block_rows), n)) if n >= 8 else n
    if block_rows < n:
        block_rows += (-block_rows) % 8          # sublane-aligned row tile
    n_pad = n + (-n) % block_rows
    if n_pad != n:
        # Zero padding keeps padded rows exactly zero through Linear-1 (no
        # bias); BN sums mask them out and use inv_n = 1/true_N.
        x = jnp.pad(x, ((0, n_pad - n), (0, 0)))
    t_steps = n_pad // block_rows

    inputs = (x,
              params["w1"], params["g1"], params["be1"],
              params["w2"], params["g2"], params["be2"],
              params["w3"], params["g3"], params["be3"],
              params["w4"])
    in_specs = [pl.BlockSpec((block_rows, d_in), lambda t: (t, 0))]
    in_specs += [_whole_spec(a) for a in inputs[1:]]

    compiler_params = pltpu.CompilerParams(
        dimension_semantics=("arbitrary",),   # ingest tiles then finalize, in order
        vmem_limit_bytes=_vmem_limit_bytes())

    if return_intermediates:
        feats = (HIDDEN_DIMS[0], HIDDEN_DIMS[1], HIDDEN_DIMS[2], feature_dim)
        out_shapes = tuple(jax.ShapeDtypeStruct((n_pad, f), jnp.float32)
                           for f in feats)
        out_specs = tuple(pl.BlockSpec((n_pad, f), lambda t: (0, 0))
                          for f in feats)
        l1, l2, l3, z = pl.pallas_call(
            functools.partial(_full_kernel, n, t_steps),
            grid=(t_steps,),
            out_shape=out_shapes,
            in_specs=in_specs,
            out_specs=out_specs,
            compiler_params=compiler_params,
        )(*inputs)
        if n_pad != n:
            l1, l2, l3, z = l1[:n], l2[:n], l3[:n], z[:n]
        return z, {"layer1_output": l1, "layer2_output": l2,
                   "layer3_output": l3, "normalized_output": z}

    # z-only fast path: no layer1/2/3 HBM writebacks; pre-BN layer-1
    # activations live in a VMEM scratch slab instead.
    z = pl.pallas_call(
        functools.partial(_z_only_kernel, n, t_steps),
        grid=(t_steps,),
        out_shape=jax.ShapeDtypeStruct((n_pad, feature_dim), jnp.float32),
        in_specs=in_specs,
        out_specs=pl.BlockSpec((n_pad, feature_dim), lambda t: (0, 0)),
        scratch_shapes=[pltpu.VMEM((n_pad, HIDDEN_DIMS[0]), jnp.float32)],
        compiler_params=compiler_params,
    )(*inputs)
    if n_pad != n:
        z = z[:n]
    return z, {"normalized_output": z}


def reference_forward(x, params):
    """Pure-JAX reference (row layout, includes the Linear biases)."""
    h = x
    acts = []
    for i in range(1, 4):
        y = h @ params[f"w{i}"].T + params[f"b{i}"].reshape(1, -1)
        m = jnp.mean(y, axis=0, keepdims=True)
        v = jnp.mean((y - m) ** 2, axis=0, keepdims=True)
        y = (y - m) / jnp.sqrt(v + BN_EPS)
        y = y * params[f"g{i}"].T + params[f"be{i}"].T
        h = jnp.maximum(y, 0.0)
        acts.append(h)
    y = h @ params["w4"].T + params["b4"].reshape(1, -1)
    m = jnp.mean(y, axis=0, keepdims=True)
    v = jnp.mean((y - m) ** 2, axis=0, keepdims=True)
    y = (y - m) / jnp.sqrt(v + BN_EPS)
    z = y / jnp.maximum(jnp.sqrt(jnp.sum(y * y, axis=1, keepdims=True)), NORM_EPS)
    return z, acts


if __name__ == "__main__":
    batch, input_dim, feature_dim = 8, 16, 4
    key = jax.random.PRNGKey(0)
    kx, kp, kb = jax.random.split(key, 3)
    x = jax.random.normal(kx, (batch, input_dim), dtype=jnp.float32)
    params = init_params(input_dim, feature_dim, kp)

    # Non-zero biases prove the "bias cancels under batch-stat BN" optimisation:
    # the kernel never reads b1..b4, the reference includes them, results match.
    dims = (input_dim,) + HIDDEN_DIMS + (feature_dim,)
    bkeys = jax.random.split(kb, 4)
    for i, fan_out in enumerate(dims[1:], start=1):
        params[f"b{i}"] = 0.5 * jax.random.normal(bkeys[i - 1], (fan_out,),
                                                  dtype=jnp.float32)

    # --- single-block path (T=1, no padding) ---
    z, outs = modified_network_forward(x, params, feature_dim=feature_dim)
    jax.block_until_ready(z)
    z_ref, acts_ref = reference_forward(x, params)
    assert jnp.allclose(z, z_ref, atol=5e-4), "z mismatch (single-block path)"
    for k, a in zip(("layer1_output", "layer2_output", "layer3_output"), acts_ref):
        assert jnp.allclose(outs[k], a, atol=5e-4), f"{k} mismatch"

    # --- tiled + padded path (batch=300, 128-row tiles -> 3 grid steps) ---
    n_big = 300
    x2 = jax.random.normal(jax.random.fold_in(kx, 1), (n_big, input_dim),
                           dtype=jnp.float32)
    z2, outs2 = modified_network_forward(x2, params, feature_dim=feature_dim,
                                         block_rows=128)
    jax.block_until_ready(z2)
    z2_ref, acts2_ref = reference_forward(x2, params)
    assert z2.shape == (n_big, feature_dim)
    assert jnp.allclose(z2, z2_ref, atol=5e-4), "z mismatch (tiled path)"
    for k, a in zip(("layer1_output", "layer2_output", "layer3_output"), acts2_ref):
        assert jnp.allclose(outs2[k], a, atol=5e-4), f"{k} mismatch (tiled path)"

    # --- z-only fast path ---
    z3, _ = modified_network_forward(x2, params, feature_dim=feature_dim,
                                     return_intermediates=False, block_rows=128)
    jax.block_until_ready(z3)
    assert jnp.allclose(z3, z2_ref, atol=5e-4), "z mismatch (z-only path)"

    print("KERNEL_OK")
</pallas_src>

<mosaic_0001>
module attributes {stable_mosaic.version = 11 : i64} {
  func.func @_full_kernel(%arg0: i32, %arg1: memref<8x16xf32, #tpu.memory_space<vmem>>, %arg2: memref<32x16xf32, #tpu.memory_space<vmem>>, %arg3: memref<32x1xf32, #tpu.memory_space<vmem>>, %arg4: memref<32x1xf32, #tpu.memory_space<vmem>>, %arg5: memref<16x32xf32, #tpu.memory_space<vmem>>, %arg6: memref<16x1xf32, #tpu.memory_space<vmem>>, %arg7: memref<16x1xf32, #tpu.memory_space<vmem>>, %arg8: memref<8x16xf32, #tpu.memory_space<vmem>>, %arg9: memref<8x1xf32, #tpu.memory_space<vmem>>, %arg10: memref<8x1xf32, #tpu.memory_space<vmem>>, %arg11: memref<4x8xf32, #tpu.memory_space<vmem>>, %arg12: memref<8x32xf32, #tpu.memory_space<vmem>>, %arg13: memref<8x16xf32, #tpu.memory_space<vmem>>, %arg14: memref<8x8xf32, #tpu.memory_space<vmem>>, %arg15: memref<8x4xf32, #tpu.memory_space<vmem>>) attributes {dimension_semantics = [#tpu.dimension_semantics<arbitrary>], iteration_bounds = array<i64: 1>, scalar_prefetch = 0 : i64, scratch_operands = 0 : i64, tpu.core_type = #tpu.core_type<tc>, window_params = [{transform_indices = @transform_0, window_bounds = array<i64: 8, 16>}, {pipeline_mode = #tpu.pipeline_mode<synchronous>, transform_indices = @transform_1, window_bounds = array<i64: 32, 16>}, {pipeline_mode = #tpu.pipeline_mode<synchronous>, transform_indices = @transform_2, window_bounds = array<i64: 32, 1>}, {pipeline_mode = #tpu.pipeline_mode<synchronous>, transform_indices = @transform_3, window_bounds = array<i64: 32, 1>}, {pipeline_mode = #tpu.pipeline_mode<synchronous>, transform_indices = @transform_4, window_bounds = array<i64: 16, 32>}, {pipeline_mode = #tpu.pipeline_mode<synchronous>, transform_indices = @transform_5, window_bounds = array<i64: 16, 1>}, {pipeline_mode = #tpu.pipeline_mode<synchronous>, transform_indices = @transform_6, window_bounds = array<i64: 16, 1>}, {pipeline_mode = #tpu.pipeline_mode<synchronous>, transform_indices = @transform_7, window_bounds = array<i64: 8, 16>}, {pipeline_mode = #tpu.pipeline_mode<synchronous>, transform_indices = @transform_8, window_bounds = array<i64: 8, 1>}, {pipeline_mode = #tpu.pipeline_mode<synchronous>, transform_indices = @transform_9, window_bounds = array<i64: 8, 1>}, {pipeline_mode = #tpu.pipeline_mode<synchronous>, transform_indices = @transform_10, window_bounds = array<i64: 4, 8>}, {pipeline_mode = #tpu.pipeline_mode<synchronous>, transform_indices = @transform_11, window_bounds = array<i64: 8, 32>}, {pipeline_mode = #tpu.pipeline_mode<synchronous>, transform_indices = @transform_12, window_bounds = array<i64: 8, 16>}, {pipeline_mode = #tpu.pipeline_mode<synchronous>, transform_indices = @transform_13, window_bounds = array<i64: 8, 8>}, {pipeline_mode = #tpu.pipeline_mode<synchronous>, transform_indices = @transform_14, window_bounds = array<i64: 8, 4>}]} {
    %c0 = arith.constant 0 : index
    %c0_0 = arith.constant 0 : index
    %0 = vector.load %arg1[%c0, %c0_0] : memref<8x16xf32, #tpu.memory_space<vmem>>, vector<8x16xf32>
    %c0_1 = arith.constant 0 : index
    %c0_2 = arith.constant 0 : index
    %1 = vector.load %arg2[%c0_1, %c0_2] : memref<32x16xf32, #tpu.memory_space<vmem>>, vector<32x16xf32>
    %cst = arith.constant dense<0.000000e+00> : vector<8x32xf32>
    %2 = tpu.matmul %0, %1, %cst {dimension_numbers = #tpu.dot_dimension_numbers<[1], [1], [0], [0], [0, 0, 1, 0], [], []>} : vector<8x16xf32>, vector<32x16xf32>, vector<8x32xf32> -> vector<8x32xf32>
    %c0_3 = arith.constant 0 : index
    %c0_4 = arith.constant 0 : index
    %3 = vector.load %arg12[%c0_3, %c0_4] : memref<8x32xf32, #tpu.memory_space<vmem>>, vector<8x32xf32>
    tpu.vector_store %arg12[%c0_3, %c0_4], %2 {strides = array<i32>} : memref<8x32xf32, #tpu.memory_space<vmem>>, vector<8x32xf32>,
    %c0_5 = arith.constant 0 : index
    %c0_6 = arith.constant 0 : index
    %4 = vector.load %arg12[%c0_5, %c0_6] : memref<8x32xf32, #tpu.memory_space<vmem>>, vector<8x32xf32>
    %c0_7 = arith.constant 0 : index
    %c0_8 = arith.constant 0 : index
    %5 = vector.load %arg3[%c0_7, %c0_8] : memref<32x1xf32, #tpu.memory_space<vmem>>, vector<32x1xf32>
    %c0_9 = arith.constant 0 : index
    %c0_10 = arith.constant 0 : index
    %6 = vector.load %arg4[%c0_9, %c0_10] : memref<32x1xf32, #tpu.memory_space<vmem>>, vector<32x1xf32>
    %c0_11 = arith.constant 0 : index
    %c0_12 = arith.constant 0 : index
    %7 = vector.load %arg5[%c0_11, %c0_12] : memref<16x32xf32, #tpu.memory_space<vmem>>, vector<16x32xf32>
    %c0_13 = arith.constant 0 : index
    %c0_14 = arith.constant 0 : index
    %8 = vector.load %arg6[%c0_13, %c0_14] : memref<16x1xf32, #tpu.memory_space<vmem>>, vector<16x1xf32>
    %c0_15 = arith.constant 0 : index
    %c0_16 = arith.constant 0 : index
    %9 = vector.load %arg7[%c0_15, %c0_16] : memref<16x1xf32, #tpu.memory_space<vmem>>, vector<16x1xf32>
    %c0_17 = arith.constant 0 : index
    %c0_18 = arith.constant 0 : index
    %10 = vector.load %arg8[%c0_17, %c0_18] : memref<8x16xf32, #tpu.memory_space<vmem>>, vector<8x16xf32>
    %c0_19 = arith.constant 0 : index
    %c0_20 = arith.constant 0 : index
    %11 = vector.load %arg9[%c0_19, %c0_20] : memref<8x1xf32, #tpu.memory_space<vmem>>, vector<8x1xf32>
    %c0_21 = arith.constant 0 : index
    %c0_22 = arith.constant 0 : index
    %12 = vector.load %arg10[%c0_21, %c0_22] : memref<8x1xf32, #tpu.memory_space<vmem>>, vector<8x1xf32>
    %c0_23 = arith.constant 0 : index
    %c0_24 = arith.constant 0 : index
    %13 = vector.load %arg11[%c0_23, %c0_24] : memref<4x8xf32, #tpu.memory_space<vmem>>, vector<4x8xf32>
    %14 = tpu.iota {dimensions = array<i32: 0>} : vector<32x32xi32>
    %15 = tpu.iota {dimensions = array<i32: 1>} : vector<32x32xi32>
    %16 = arith.cmpi eq, %14, %15 : vector<32x32xi32>
    %17 = arith.extui %16 : vector<32x32xi1> to vector<32x32xi32>
    %18 = arith.sitofp %17 : vector<32x32xi32> to vector<32x32xf32>
    %cst_25 = arith.constant dense<0.000000e+00> : vector<32x8xf32>
    %19 = tpu.matmul %18, %4, %cst_25 {dimension_numbers = #tpu.dot_dimension_numbers<[1], [1], [0], [0], [0, 0, 1, 0], [], []>} : vector<32x32xf32>, vector<8x32xf32>, vector<32x8xf32> -> vector<32x8xf32>
    %cst_26 = arith.constant dense<0.000000e+00> : vector<32xf32>
    %20 = vector.multi_reduction <add>, %19, %cst_26 [1] : vector<32x8xf32> to vector<32xf32>
    %21 = vector.shape_cast %20 : vector<32xf32> to vector<32x1xf32>
    %cst_27 = arith.constant 1.250000e-01 : f32
    %22 = vector.broadcast %cst_27 : f32 to vector<32x1xf32>
    %23 = arith.mulf %21, %22 : vector<32x1xf32>
    %24 = vector.broadcast %23 : vector<32x1xf32> to vector<32x8xf32>
    %25 = arith.subf %19, %24 : vector<32x8xf32>
    %26 = arith.mulf %25, %25 : vector<32x8xf32>
    %cst_28 = arith.constant dense<0.000000e+00> : vector<32xf32>
    %27 = vector.multi_reduction <add>, %26, %cst_28 [1] : vector<32x8xf32> to vector<32xf32>
    %28 = vector.shape_cast %27 : vector<32xf32> to vector<32x1xf32>
    %cst_29 = arith.constant 1.250000e-01 : f32
    %29 = vector.broadcast %cst_29 : f32 to vector<32x1xf32>
    %30 = arith.mulf %28, %29 : vector<32x1xf32>
    %cst_30 = arith.constant 9.99999974E-6 : f32
    %31 = vector.broadcast %cst_30 : f32 to vector<32x1xf32>
    %32 = arith.addf %30, %31 : vector<32x1xf32>
    %33 = math.rsqrt %32 : vector<32x1xf32>
    %34 = arith.mulf %5, %33 : vector<32x1xf32>
    %35 = vector.broadcast %34 : vector<32x1xf32> to vector<32x8xf32>
    %36 = arith.mulf %25, %35 : vector<32x8xf32>
    %37 = vector.broadcast %6 : vector<32x1xf32> to vector<32x8xf32>
    %38 = arith.addf %36, %37 : vector<32x8xf32>
    %cst_31 = arith.constant 0.000000e+00 : f32
    %39 = vector.broadcast %cst_31 : f32 to vector<32x8xf32>
    %40 = arith.maximumf %38, %39 : vector<32x8xf32>
    %cst_32 = arith.constant dense<0.000000e+00> : vector<16x8xf32>
    %41 = tpu.matmul %7, %40, %cst_32 {dimension_numbers = #tpu.dot_dimension_numbers<[1], [0], [0], [1], [0, 0, 1, 1], [], []>} : vector<16x32xf32>, vector<32x8xf32>, vector<16x8xf32> -> vector<16x8xf32>
    %cst_33 = arith.constant dense<0.000000e+00> : vector<16xf32>
    %42 = vector.multi_reduction <add>, %41, %cst_33 [1] : vector<16x8xf32> to vector<16xf32>
    %43 = vector.shape_cast %42 : vector<16xf32> to vector<16x1xf32>
    %cst_34 = arith.constant 1.250000e-01 : f32
    %44 = vector.broadcast %cst_34 : f32 to vector<16x1xf32>
    %45 = arith.mulf %43, %44 : vector<16x1xf32>
    %46 = vector.broadcast %45 : vector<16x1xf32> to vector<16x8xf32>
    %47 = arith.subf %41, %46 : vector<16x8xf32>
    %48 = arith.mulf %47, %47 : vector<16x8xf32>
    %cst_35 = arith.constant dense<0.000000e+00> : vector<16xf32>
    %49 = vector.multi_reduction <add>, %48, %cst_35 [1] : vector<16x8xf32> to vector<16xf32>
    %50 = vector.shape_cast %49 : vector<16xf32> to vector<16x1xf32>
    %cst_36 = arith.constant 1.250000e-01 : f32
    %51 = vector.broadcast %cst_36 : f32 to vector<16x1xf32>
    %52 = arith.mulf %50, %51 : vector<16x1xf32>
    %cst_37 = arith.constant 9.99999974E-6 : f32
    %53 = vector.broadcast %cst_37 : f32 to vector<16x1xf32>
    %54 = arith.addf %52, %53 : vector<16x1xf32>
    %55 = math.rsqrt %54 : vector<16x1xf32>
    %56 = arith.mulf %8, %55 : vector<16x1xf32>
    %57 = vector.broadcast %56 : vector<16x1xf32> to vector<16x8xf32>
    %58 = arith.mulf %47, %57 : vector<16x8xf32>
    %59 = vector.broadcast %9 : vector<16x1xf32> to vector<16x8xf32>
    %60 = arith.addf %58, %59 : vector<16x8xf32>
    %cst_38 = arith.constant 0.000000e+00 : f32
    %61 = vector.broadcast %cst_38 : f32 to vector<16x8xf32>
    %62 = arith.maximumf %60, %61 : vector<16x8xf32>
    %cst_39 = arith.constant dense<0.000000e+00> : vector<8x8xf32>
    %63 = tpu.matmul %10, %62, %cst_39 {dimension_numbers = #tpu.dot_dimension_numbers<[1], [0], [0], [1], [0, 0, 1, 1], [], []>} : vector<8x16xf32>, vector<16x8xf32>, vector<8x8xf32> -> vector<8x8xf32>
    %cst_40 = arith.constant dense<0.000000e+00> : vector<8xf32>
    %64 = vector.multi_reduction <add>, %63, %cst_40 [1] : vector<8x8xf32> to vector<8xf32>
    %65 = vector.shape_cast %64 : vector<8xf32> to vector<8x1xf32>
    %cst_41 = arith.constant 1.250000e-01 : f32
    %66 = vector.broadcast %cst_41 : f32 to vector<8x1xf32>
    %67 = arith.mulf %65, %66 : vector<8x1xf32>
    %68 = vector.broadcast %67 : vector<8x1xf32> to vector<8x8xf32>
    %69 = arith.subf %63, %68 : vector<8x8xf32>
    %70 = arith.mulf %69, %69 : vector<8x8xf32>
    %cst_42 = arith.constant dense<0.000000e+00> : vector<8xf32>
    %71 = vector.multi_reduction <add>, %70, %cst_42 [1] : vector<8x8xf32> to vector<8xf32>
    %72 = vector.shape_cast %71 : vector<8xf32> to vector<8x1xf32>
    %cst_43 = arith.constant 1.250000e-01 : f32
    %73 = vector.broadcast %cst_43 : f32 to vector<8x1xf32>
    %74 = arith.mulf %72, %73 : vector<8x1xf32>
    %cst_44 = arith.constant 9.99999974E-6 : f32
    %75 = vector.broadcast %cst_44 : f32 to vector<8x1xf32>
    %76 = arith.addf %74, %75 : vector<8x1xf32>
    %77 = math.rsqrt %76 : vector<8x1xf32>
    %78 = arith.mulf %11, %77 : vector<8x1xf32>
    %79 = vector.broadcast %78 : vector<8x1xf32> to vector<8x8xf32>
    %80 = arith.mulf %69, %79 : vector<8x8xf32>
    %81 = vector.broadcast %12 : vector<8x1xf32> to vector<8x8xf32>
    %82 = arith.addf %80, %81 : vector<8x8xf32>
    %cst_45 = arith.constant 0.000000e+00 : f32
    %83 = vector.broadcast %cst_45 : f32 to vector<8x8xf32>
    %84 = arith.maximumf %82, %83 : vector<8x8xf32>
    %cst_46 = arith.constant dense<0.000000e+00> : vector<4x8xf32>
    %85 = tpu.matmul %13, %84, %cst_46 {dimension_numbers = #tpu.dot_dimension_numbers<[1], [0], [0], [1], [0, 0, 1, 1], [], []>} : vector<4x8xf32>, vector<8x8xf32>, vector<4x8xf32> -> vector<4x8xf32>
    %cst_47 = arith.constant dense<0.000000e+00> : vector<4xf32>
    %86 = vector.multi_reduction <add>, %85, %cst_47 [1] : vector<4x8xf32> to vector<4xf32>
    %87 = vector.shape_cast %86 : vector<4xf32> to vector<4x1xf32>
    %cst_48 = arith.constant 1.250000e-01 : f32
    %88 = vector.broadcast %cst_48 : f32 to vector<4x1xf32>
    %89 = arith.mulf %87, %88 : vector<4x1xf32>
    %90 = vector.broadcast %89 : vector<4x1xf32> to vector<4x8xf32>
    %91 = arith.subf %85, %90 : vector<4x8xf32>
    %92 = arith.mulf %91, %91 : vector<4x8xf32>
    %cst_49 = arith.constant dense<0.000000e+00> : vector<4xf32>
    %93 = vector.multi_reduction <add>, %92, %cst_49 [1] : vector<4x8xf32> to vector<4xf32>
    %94 = vector.shape_cast %93 : vector<4xf32> to vector<4x1xf32>
    %cst_50 = arith.constant 1.250000e-01 : f32
    %95 = vector.broadcast %cst_50 : f32 to vector<4x1xf32>
    %96 = arith.mulf %94, %95 : vector<4x1xf32>
    %cst_51 = arith.constant 9.99999974E-6 : f32
    %97 = vector.broadcast %cst_51 : f32 to vector<4x1xf32>
    %98 = arith.addf %96, %97 : vector<4x1xf32>
    %99 = math.rsqrt %98 : vector<4x1xf32>
    %100 = vector.broadcast %99 : vector<4x1xf32> to vector<4x8xf32>
    %101 = arith.mulf %91, %100 : vector<4x8xf32>
    %102 = arith.mulf %101, %101 : vector<4x8xf32>
    %cst_52 = arith.constant dense<0.000000e+00> : vector<8xf32>
    %103 = vector.multi_reduction <add>, %102, %cst_52 [0] : vector<4x8xf32> to vector<8xf32>
    %104 = vector.shape_cast %103 : vector<8xf32> to vector<1x8xf32>
    %cst_53 = arith.constant 1.000000e-24 : f32
    %105 = vector.broadcast %cst_53 : f32 to vector<1x8xf32>
    %106 = arith.maximumf %104, %105 : vector<1x8xf32>
    %107 = math.rsqrt %106 : vector<1x8xf32>
    %108 = vector.broadcast %107 : vector<1x8xf32> to vector<4x8xf32>
    %109 = arith.mulf %101, %108 : vector<4x8xf32>
    %110 = tpu.iota {dimensions = array<i32: 0>} : vector<32x32xi32>
    %111 = tpu.iota {dimensions = array<i32: 1>} : vector<32x32xi32>
    %112 = arith.cmpi eq, %110, %111 : vector<32x32xi32>
    %113 = arith.extui %112 : vector<32x32xi1> to vector<32x32xi32>
    %114 = arith.sitofp %113 : vector<32x32xi32> to vector<32x32xf32>
    %cst_54 = arith.constant dense<0.000000e+00> : vector<8x32xf32>
    %115 = tpu.matmul %40, %114, %cst_54 {dimension_numbers = #tpu.dot_dimension_numbers<[0], [0], [1], [1], [0, 1, 1, 1], [], []>} : vector<32x8xf32>, vector<32x32xf32>, vector<8x32xf32> -> vector<8x32xf32>
    %c0_55 = arith.constant 0 : index
    %c0_56 = arith.constant 0 : index
    %116 = vector.load %arg12[%c0_55, %c0_56] : memref<8x32xf32, #tpu.memory_space<vmem>>, vector<8x32xf32>
    tpu.vector_store %arg12[%c0_55, %c0_56], %115 {strides = array<i32>} : memref<8x32xf32, #tpu.memory_space<vmem>>, vector<8x32xf32>,
    %117 = tpu.iota {dimensions = array<i32: 0>} : vector<16x16xi32>
    %118 = tpu.iota {dimensions = array<i32: 1>} : vector<16x16xi32>
    %119 = arith.cmpi eq, %117, %118 : vector<16x16xi32>
    %120 = arith.extui %119 : vector<16x16xi1> to vector<16x16xi32>
    %121 = arith.sitofp %120 : vector<16x16xi32> to vector<16x16xf32>
    %cst_57 = arith.constant dense<0.000000e+00> : vector<8x16xf32>
    %122 = tpu.matmul %62, %121, %cst_57 {dimension_numbers = #tpu.dot_dimension_numbers<[0], [0], [1], [1], [0, 1, 1, 1], [], []>} : vector<16x8xf32>, vector<16x16xf32>, vector<8x16xf32> -> vector<8x16xf32>
    %c0_58 = arith.constant 0 : index
    %c0_59 = arith.constant 0 : index
    %123 = vector.load %arg13[%c0_58, %c0_59] : memref<8x16xf32, #tpu.memory_space<vmem>>, vector<8x16xf32>
    tpu.vector_store %arg13[%c0_58, %c0_59], %122 {strides = array<i32>} : memref<8x16xf32, #tpu.memory_space<vmem>>, vector<8x16xf32>,
    %124 = tpu.iota {dimensions = array<i32: 0>} : vector<8x8xi32>
    %125 = tpu.iota {dimensions = array<i32: 1>} : vector<8x8xi32>
    %126 = arith.cmpi eq, %124, %125 : vector<8x8xi32>
    %127 = arith.extui %126 : vector<8x8xi1> to vector<8x8xi32>
    %128 = arith.sitofp %127 : vector<8x8xi32> to vector<8x8xf32>
    %cst_60 = arith.constant dense<0.000000e+00> : vector<8x8xf32>
    %129 = tpu.matmul %84, %128, %cst_60 {dimension_numbers = #tpu.dot_dimension_numbers<[0], [0], [1], [1], [0, 1, 1, 1], [], []>} : vector<8x8xf32>, vector<8x8xf32>, vector<8x8xf32> -> vector<8x8xf32>
    %c0_61 = arith.constant 0 : index
    %c0_62 = arith.constant 0 : index
    %130 = vector.load %arg14[%c0_61, %c0_62] : memref<8x8xf32, #tpu.memory_space<vmem>>, vector<8x8xf32>
    tpu.vector_store %arg14[%c0_61, %c0_62], %129 {strides = array<i32>} : memref<8x8xf32, #tpu.memory_space<vmem>>, vector<8x8xf32>,
    %131 = tpu.iota {dimensions = array<i32: 0>} : vector<4x4xi32>
    %132 = tpu.iota {dimensions = array<i32: 1>} : vector<4x4xi32>
    %133 = arith.cmpi eq, %131, %132 : vector<4x4xi32>
    %134 = arith.extui %133 : vector<4x4xi1> to vector<4x4xi32>
    %135 = arith.sitofp %134 : vector<4x4xi32> to vector<4x4xf32>
    %cst_63 = arith.constant dense<0.000000e+00> : vector<8x4xf32>
    %136 = tpu.matmul %109, %135, %cst_63 {dimension_numbers = #tpu.dot_dimension_numbers<[0], [0], [1], [1], [0, 1, 1, 1], [], []>} : vector<4x8xf32>, vector<4x4xf32>, vector<8x4xf32> -> vector<8x4xf32>
    %c0_64 = arith.constant 0 : index
    %c0_65 = arith.constant 0 : index
    %137 = vector.load %arg15[%c0_64, %c0_65] : memref<8x4xf32, #tpu.memory_space<vmem>>, vector<8x4xf32>
    tpu.vector_store %arg15[%c0_64, %c0_65], %136 {strides = array<i32>} : memref<8x4xf32, #tpu.memory_space<vmem>>, vector<8x4xf32>,
    return
  }
  func.func @transform_0(%arg0: i32) -> (i32, i32) {
    %c0_i32 = arith.constant 0 : i32
    %c0_i32_0 = arith.constant 0 : i32
    return %arg0, %c0_i32 : i32, i32
  }
  func.func @transform_1(%arg0: i32) -> (i32, i32) {
    %c0_i32 = arith.constant 0 : i32
    %c0_i32_0 = arith.constant 0 : i32
    %c0_i32_1 = arith.constant 0 : i32
    return %c0_i32, %c0_i32_0 : i32, i32
  }
  func.func @transform_2(%arg0: i32) -> (i32, i32) {
    %c0_i32 = arith.constant 0 : i32
    %c0_i32_0 = arith.constant 0 : i32
    %c0_i32_1 = arith.constant 0 : i32
    return %c0_i32, %c0_i32_0 : i32, i32
  }
  func.func @transform_3(%arg0: i32) -> (i32, i32) {
    %c0_i32 = arith.constant 0 : i32
    %c0_i32_0 = arith.constant 0 : i32
    %c0_i32_1 = arith.constant 0 : i32
    return %c0_i32, %c0_i32_0 : i32, i32
  }
  func.func @transform_4(%arg0: i32) -> (i32, i32) {
    %c0_i32 = arith.constant 0 : i32
    %c0_i32_0 = arith.constant 0 : i32
    %c0_i32_1 = arith.constant 0 : i32
    return %c0_i32, %c0_i32_0 : i32, i32
  }
  func.func @transform_5(%arg0: i32) -> (i32, i32) {
    %c0_i32 = arith.constant 0 : i32
    %c0_i32_0 = arith.constant 0 : i32
    %c0_i32_1 = arith.constant 0 : i32
    return %c0_i32, %c0_i32_0 : i32, i32
  }
  func.func @transform_6(%arg0: i32) -> (i32, i32) {
    %c0_i32 = arith.constant 0 : i32
    %c0_i32_0 = arith.constant 0 : i32
    %c0_i32_1 = arith.constant 0 : i32
    return %c0_i32, %c0_i32_0 : i32, i32
  }
  func.func @transform_7(%arg0: i32) -> (i32, i32) {
    %c0_i32 = arith.constant 0 : i32
    %c0_i32_0 = arith.constant 0 : i32
    %c0_i32_1 = arith.constant 0 : i32
    return %c0_i32, %c0_i32_0 : i32, i32
  }
  func.func @transform_8(%arg0: i32) -> (i32, i32) {
    %c0_i32 = arith.constant 0 : i32
    %c0_i32_0 = arith.constant 0 : i32
    %c0_i32_1 = arith.constant 0 : i32
    return %c0_i32, %c0_i32_0 : i32, i32
  }
  func.func @transform_9(%arg0: i32) -> (i32, i32) {
    %c0_i32 = arith.constant 0 : i32
    %c0_i32_0 = arith.constant 0 : i32
    %c0_i32_1 = arith.constant 0 : i32
    return %c0_i32, %c0_i32_0 : i32, i32
  }
  func.func @transform_10(%arg0: i32) -> (i32, i32) {
    %c0_i32 = arith.constant 0 : i32
    %c0_i32_0 = arith.constant 0 : i32
    %c0_i32_1 = arith.constant 0 : i32
    return %c0_i32, %c0_i32_0 : i32, i32
  }
  func.func @transform_11(%arg0: i32) -> (i32, i32) {
    %c0_i32 = arith.constant 0 : i32
    %c0_i32_0 = arith.constant 0 : i32
    %c0_i32_1 = arith.constant 0 : i32
    return %c0_i32, %c0_i32_0 : i32, i32
  }
  func.func @transform_12(%arg0: i32) -> (i32, i32) {
    %c0_i32 = arith.constant 0 : i32
    %c0_i32_0 = arith.constant 0 : i32
    %c0_i32_1 = arith.constant 0 : i32
    return %c0_i32, %c0_i32_0 : i32, i32
  }
  func.func @transform_13(%arg0: i32) -> (i32, i32) {
    %c0_i32 = arith.constant 0 : i32
    %c0_i32_0 = arith.constant 0 : i32
    %c0_i32_1 = arith.constant 0 : i32
    return %c0_i32, %c0_i32_0 : i32, i32
  }
  func.func @transform_14(%arg0: i32) -> (i32, i32) {
    %c0_i32 = arith.constant 0 : i32
    %c0_i32_0 = arith.constant 0 : i32
    %c0_i32_1 = arith.constant 0 : i32
    return %c0_i32, %c0_i32_0 : i32, i32
  }
}

</mosaic_0001>

<bundles_post_ra>
// kernel: modified_network_forward.1
= control target key start
LH: loop header
LB: loop body
LE: loop exit
PB: predicated region body
PF: predicated region fallthrough
CT: control target
= control target key end

     0   :  { %20 = vsyncpa [#allocation3], 0  ;;  %vm49_vm0 = vcmask 130048   ;;  %v1443_v2 = vmov 0.0|0.0   ;;  %vm1444_vm2 = vmmov 0   ;;  %v1445_v4 = vmov 0.0   ;;  %s1789_s0 = inlined_call_operand.vmem [shape: f32[8,16], index: 0, kind: input, shape index: {}]   ;;  %s1790_s1 = inlined_call_operand.vmem [shape: f32[32,16], index: 1, kind: input, shape index: {}]   ;;  %s1791_s2 = inlined_call_operand.vmem [shape: f32[32,1], index: 2, kind: input, shape index: {}]   ;;  %s1792_s3 = inlined_call_operand.vmem [shape: f32[32,1], index: 3, kind: input, shape index: {}]   ;;  %s1793_s4 = inlined_call_operand.vmem [shape: f32[16,32], index: 4, kind: input, shape index: {}]   ;;  %s1794_s5 = inlined_call_operand.vmem [shape: f32[16,1], index: 5, kind: input, shape index: {}]   ;;  %s1795_s6 = inlined_call_operand.vmem [shape: f32[16,1], index: 6, kind: input, shape index: {}]   ;;  %s1796_s7 = inlined_call_operand.vmem [shape: f32[8,16], index: 7, kind: input, shape index: {}]   ;;  %s1797_s8 = inlined_call_operand.vmem [shape: f32[8,1], index: 8, kind: input, shape index: {}]   ;;  %s1798_s9 = inlined_call_operand.vmem [shape: f32[8,1], index: 9, kind: input, shape index: {}]   ;;  %s1799_s10 = inlined_call_operand.vmem [shape: f32[4,8], index: 10, kind: input, shape index: {}]   ;;  %s1800_s11 = inlined_call_operand.hbm [shape: f32[8,32], index: 11, kind: output, shape index: {0}]   ;;  %s1801_s12 = inlined_call_operand.hbm [shape: f32[8,16], index: 12, kind: output, shape index: {1}]   ;;  %s1802_s13 = inlined_call_operand.hbm [shape: f32[8,8], index: 13, kind: output, shape index: {2}]   ;;  %s1803_s14 = inlined_call_operand.vmem [shape: f32[8,4], index: 14, kind: output, shape index: {3}]  }
   0x1   :  { %v45_v0 = vld [vmem:[%s1790_s1] sm:$0xff]  ;;  %v46_v1 = vld [vmem:[%s1790_s1 + $0x8] sm:$0xff]  ;;  %1316 = vmatprep.subr.bf16.mxu0 %v1443_v2  ;;  %vm1318_vm1 = vmpackc.low %vm49_vm0, %vm49_vm0  ;;  %1254 = vmatprep.mubr.msk.f32.mxu0 %vm1444_vm2, %v1445_v4 }
   0x2   :  { %v1317_v3 = vpack.c.bf16 %v46_v1, %v45_v0 }
   0x3   :  { %21 = vsyncpa [#allocation5], 0  ;;  %v47_v5 = vld [vmem:[%s1790_s1 + $0x10] sm:$0xff]  ;;  %v48_v6 = vld [vmem:[%s1790_s1 + $0x18] sm:$0xff]  ;;  %v156_v9 = vlaneseq  ;;  %vm135_vm4 = vcmask 261120   ;;  %vm275_vm9 = vcmask 64512  }
   0x4   :  { %1319 = vmatpush3.bf16.xpose.msk.msra.mxu0 %vm1318_vm1, %v1317_v3  ;;  %v1321_v7 = vpack.c.bf16 %v48_v6, %v47_v5  ;;  %v44_v8 = vld [vmem:[%s1789_s0] sm:$0xff]  ;;  %v1446_v51 = vmov 0   ;;  %v139_v0 = vld [vmem:[%s1791_s2 + $0x8] sm:$0xff]  ;;  %vm685_vm10 = vcmask 60416   ;;  %vm1064_vm12 = vcmask 1043456   ;;  %s1450_s16 = smov [#allocation2]  }
   0x5   :  { %1320 = vmatprep.subr.bf16.mxu0 %v1443_v2  ;;  %v1552_v10 = vshrl.u32 %v156_v9, 7  ;;  %v1554_v11 = vand.u32 127, %v156_v9  ;;  %1353 = vset.pattern.permute.xlu0 %v1446_v51  ;;  %v138_v59 = vld [vmem:[%s1791_s2] sm:$0xff]  ;;  %v143_v9 = vld [vmem:[%s1792_s3 + $0x8] sm:$0xff]  ;;  %vm1060_vm13 = vcmask 31744   ;;  %s1144_s17 = sshll.u32 %s1450_s16, 4  ;;  %s1145_s17 = int_to_ptr.vmem [resolvable:$true] %s1144_s17 }
   0x6   :  { %1354 = vset.pattern.permute.xlu1 %v1446_v51 }
   0x7   :  { %v1557_v12 = vadd.s32 8, %v1552_v10  ;;  %vm163_vm3 = vcmp.eq.s32.totalorder %v1552_v10, %v1554_v11  ;;  %v159_v14 = vadd.s32 16, %v1552_v10  ;;  %v160_v15 = vadd.s32 24, %v1552_v10 }
   0x8   :  { %v1565_v13 = vsel %vm163_vm3, 1.0, %v1445_v4 }
   0x9   :  { %vm164_vm5 = vcmp.eq.s32.totalorder %v1557_v12, %v1554_v11  ;;  %1259 = vmatprep.mubr.msk.f32.mxu1 %vm135_vm4, %v1565_v13  ;;  %vm165_vm6 = vcmp.eq.s32.totalorder %v159_v14, %v1554_v11  ;;  %vm166_vm7 = vcmp.eq.s32.totalorder %v160_v15, %v1554_v11  ;;  %v144_v14 = vld [vmem:[%s1792_s3 + $0x10] sm:$0xff] }
   0xa   :  { %vm1575_vm8 = vmpackc.low %vm166_vm7, %vm165_vm6  ;;  %v1189_v20 = vsel %vm164_vm5, 1.0, %v1445_v4  ;;  %v1190_v21 = vsel %vm165_vm6, 1.0, %v1445_v4  ;;  %v1191_v22 = vsel %vm166_vm7, 1.0, %v1445_v4 }
   0xb   :  { %vm1336_vm11 = vmpackc.low %vm164_vm5, %vm163_vm3 }
   0xc   :  { %1323 = vmatpush3.bf16.xpose.msk.msra.mxu0 %vm1318_vm1, %v1321_v7 }
   0xd   :  { %1283 = vmatprep.subr.mxu0 %v1445_v4 }
  0x13   :  { %1255 = vmatmul.mubr.msk.f32.vlgmr.msra.gmra.mrb[0].mxu0 %vm49_vm0, %v44_v8  ;;  %v142_v8 = vld [vmem:[%s1792_s3] sm:$0xff] }
  0x14   :  { %1285 = vmatprep.mubr.msk.f32.mxu0 %vm1444_vm2, %v1445_v4 }
  0xe6   :  { %v131_v17 = vpop.f32.mrb[0].mxu0 }
  0xe7   :  { %136 = vst.msk [vmem:[#allocation2] sm:$0xff] %vm135_vm4, %v131_v17  ;;  %v1256_v18 = vpop.f32.mrb[1].mxu0  ;;  %v141_v17 = vld [vmem:[%s1791_s2 + $0x18] sm:$0xff] }
  0xee   :  { %v137_v19 = vld [vmem:[#allocation2] sm:$0xff] }
  0xef   :  { %1257 = vmatprep.subr.msk.mxu1 %vm135_vm4, %v137_v19 }
  0xf0   :  { %1258 = vmatpush3.xpose.msk.msra.mxu1 %vm135_vm4, %v137_v19 }
  0xf3   :  { %1260 = vmatmul.mubr.msk.f32.vlgmr.msra.gmra.mrb[0].mxu1 %vm135_vm4, %v1189_v20  ;;  %v140_v20 = vld [vmem:[%s1791_s2 + $0x10] sm:$0xff] }
  0xf4   :  { %1262 = vmatprep.mubr.msk.f32.mxu1 %vm135_vm4, %v1190_v21 }
  0xf7   :  { %1263 = vmatmul.mubr.msk.f32.gmra.mrb[2].mxu1 %vm135_vm4, %v1191_v22  ;;  %v145_v22 = vld [vmem:[%s1792_s3 + $0x18] sm:$0xff] }
 0x1c6   :  { %v1261_v23 = vpop.f32.mrb[0].mxu1 }
 0x1c7   :  { %v256_v24 = vpop.f32.mrb[1].mxu1  ;;  %v279_v28 = vsel %vm275_vm9, %v1261_v23, 0.0 }
 0x1c8   :  { %v276_v25 = vsel %vm275_vm9, %v256_v24, 0.0 }
 0x1c9   :  { %277 = vadd.xlane.f32.xlu0 %v276_v25 }
 0x1ca   :  { %v1264_v26 = vpop.f32.mrb[2].mxu1 }
 0x1cb   :  { %v266_v27 = vpop.f32.mrb[3].mxu1  ;;  %v285_v30 = vsel %vm275_vm9, %v1264_v26, 0.0 }
 0x1cc   :  { %v282_v29 = vsel %vm275_vm9, %v266_v27, 0.0 }
 0x1cd   :  { %280 = vadd.xlane.f32.xlu0 %v279_v28  ;;  %283 = vadd.xlane.f32.xlu1 %v282_v29 }
 0x1d1   :  { %286 = vadd.xlane.f32.xlu1 %v285_v30 }
 0x256   :  { %v278_v31 = vpop.xlane.xlu0 %277 }
 0x257   :  { %v288_v32 = vmul.f32 0.125, %v278_v31 }
 0x259   :  { %v1595_v33 = vsub.f32 %v256_v24, %v288_v32 }
 0x25a   :  { %v281_v34 = vpop.xlane.xlu0 %280  ;;  %v284_v35 = vpop.xlane.xlu1 %283 }
 0x25b   :  { %v289_v36 = vmul.f32 0.125, %v281_v34  ;;  %v290_v37 = vmul.f32 0.125, %v284_v35  ;;  %v296_v38 = vmul.f32 %v1595_v33, %v1595_v33 }
 0x25d   :  { %v1599_v39 = vsub.f32 %v1261_v23, %v289_v36  ;;  %v1601_v40 = vsub.f32 %v266_v27, %v290_v37  ;;  %v300_v41 = vsel %vm275_vm9, %v296_v38, 0.0  ;;  %v146_v23 = vld [vmem:[%s1793_s4] sm:$0xff] }
 0x25e   :  { %301 = vadd.xlane.f32.xlu0 %v300_v41  ;;  %v287_v42 = vpop.xlane.xlu1 %286  ;;  %1273 = vmatprep.mubr.msk.f32.mxu1 %vm135_vm4, %v146_v23 }
 0x25f   :  { %v291_v43 = vmul.f32 0.125, %v287_v42  ;;  %v297_v44 = vmul.f32 %v1599_v39, %v1599_v39  ;;  %v298_v45 = vmul.f32 %v1601_v40, %v1601_v40 }
 0x261   :  { %v1608_v46 = vsub.f32 %v1264_v26, %v291_v43  ;;  %v303_v47 = vsel %vm275_vm9, %v297_v44, 0.0  ;;  %v306_v48 = vsel %vm275_vm9, %v298_v45, 0.0 }
 0x262   :  { %304 = vadd.xlane.f32.xlu1 %v303_v47  ;;  %307 = vadd.xlane.f32.xlu0 %v306_v48 }
 0x263   :  { %v299_v49 = vmul.f32 %v1608_v46, %v1608_v46 }
 0x265   :  { %v309_v50 = vsel %vm275_vm9, %v299_v49, 0.0 }
 0x266   :  { %310 = vadd.xlane.f32.xlu1 %v309_v50 }
 0x2eb   :  { %v302_v52 = vpop.xlane.xlu0 %301 }
 0x2ec   :  { %v312_v53 = vmul.f32 0.125, %v302_v52 }
 0x2ee   :  { %v316_v54 = vadd.f32 1e-05, %v312_v53 }
 0x2ef   :  { %v305_v55 = vpop.xlane.xlu1 %304  ;;  %v308_v63 = vpop.xlane.xlu0 %307 }
 0x2f0   :  { %1355 = vrsqrt.f32 %v316_v54  ;;  %v313_v56 = vmul.f32 0.125, %v305_v55  ;;  %v314_v3 = vmul.f32 0.125, %v308_v63 }
 0x2f2   :  { %v317_v57 = vadd.f32 1e-05, %v313_v56  ;;  %v318_v7 = vadd.f32 1e-05, %v314_v3 }
 0x2f3   :  { %v311_v58 = vpop.xlane.xlu1 %310 }
 0x2f4   :  { %1357 = vrsqrt.f32 %v317_v57  ;;  %v315_v61 = vmul.f32 0.125, %v311_v58 }
 0x2f6   :  { %v319_v5 = vadd.f32 1e-05, %v315_v61 }
 0x2f8   :  { %1359 = vrsqrt.f32 %v319_v5  ;;  %v149_v5 = vld [vmem:[%s1794_s5 + $0x8] sm:$0xff] }
 0x2f9   :  { %1361 = vrsqrt.f32 %v318_v7 }
 0x2fa   :  { %v1356_v60 = vpop.eup %1355 }
 0x2fb   :  { %v324_v62 = vmul.f32 %v1356_v60, %v138_v59 }
 0x2fd   :  { %330 = vperm.xlu0 %1353, %v324_v62  }
 0x2fe   :  { %v1358_v1 = vpop.eup %1357 }
 0x2ff   :  { %v325_v6 = vmul.f32 %v1358_v1, %v139_v0 }
 0x301   :  { %335 = vperm.xlu1 %1354, %v325_v6   ;;  %v148_v6 = vld [vmem:[%s1794_s5] sm:$0xff] }
 0x302   :  { %v1360_v15 = vpop.eup %1359 }
 0x303   :  { %v327_v18 = vmul.f32 %v1360_v15, %v141_v17  ;;  %v1362_v19 = vpop.eup %1361  ;;  %v150_v15 = vld [vmem:[%s1795_s6] sm:$0xff]  ;;  %v151_v17 = vld [vmem:[%s1795_s6 + $0x8] sm:$0xff] }
 0x304   :  { %v326_v21 = vmul.f32 %v1362_v19, %v140_v20 }
 0x305   :  { %354 = vperm.xlu1 %1354, %v142_v8  }
 0x309   :  { %359 = vperm.xlu1 %1354, %v143_v9  }
 0x30d   :  { %364 = vperm.xlu1 %1354, %v144_v14  }
 0x311   :  { %345 = vperm.xlu1 %1354, %v327_v18  }
 0x315   :  { %340 = vperm.xlu1 %1354, %v326_v21  }
 0x319   :  { %369 = vperm.xlu1 %1354, %v145_v22  }
 0x37c   :  { %v331_v25 = vpop.permute.xlu0 %330 }
 0x37d   :  { %v348_v27 = vmul.f32 %v331_v25, %v1595_v33 }
 0x380   :  { %v336_v24 = vpop.permute.xlu1 %335 }
 0x381   :  { %v349_v28 = vmul.f32 %v336_v24, %v1599_v39 }
 0x384   :  { %v355_v26 = vpop.permute.xlu1 %354 }
 0x385   :  { %v1645_v29 = vadd.f32 %v355_v26, %v348_v27 }
 0x387   :  { %v376_v32 = vmax.f32 %v1645_v29, 0.0  ;;  %v1447_v29 = vmov 1.0|1.0  }
 0x388   :  { %v360_v30 = vpop.permute.xlu1 %359 }
 0x389   :  { %v1647_v31 = vadd.f32 %v360_v30, %v349_v28  ;;  %v152_v30 = vld [vmem:[%s1796_s7] sm:$0xff] }
 0x38b   :  { %v377_v34 = vmax.f32 %v1647_v31, 0.0 }
 0x38c   :  { %v365_v35 = vpop.permute.xlu1 %364 }
 0x38d   :  { %v1324_v36 = vpack.c.bf16 %v377_v34, %v376_v32 }
 0x38f   :  { %1325 = vmatprep.subr.bf16.mxu1 %v1324_v36 }
 0x390   :  { %1327 = vmatpush3.bf16.msra.mxu1 %v1324_v36  ;;  %v346_v33 = vpop.permute.xlu1 %345 }
 0x391   :  { %v351_v39 = vmul.f32 %v346_v33, %v1608_v46 }
 0x394   :  { %v341_v37 = vpop.permute.xlu1 %340 }
 0x395   :  { %v350_v38 = vmul.f32 %v341_v37, %v1601_v40  ;;  %v147_v40 = vld [vmem:[%s1793_s4 + $0x8] sm:$0xff]  ;;  %v154_v37 = vld [vmem:[%s1798_s9] sm:$0xff] }
 0x397   :  { %v1657_v41 = vadd.f32 %v365_v35, %v350_v38 }
 0x398   :  { %v370_v42 = vpop.permute.xlu1 %369 }
 0x399   :  { %v1659_v43 = vadd.f32 %v370_v42, %v351_v39  ;;  %v378_v44 = vmax.f32 %v1657_v41, 0.0 }
 0x39b   :  { %v379_v45 = vmax.f32 %v1659_v43, 0.0 }
 0x39d   :  { %v1328_v47 = vpack.c.bf16 %v379_v45, %v378_v44 }
 0x39f   :  { %1329 = vmatprep.subr.bf16.mxu1 %v1328_v47 }
 0x3a0   :  { %1331 = vmatpush3.bf16.msra.mxu1 %v1328_v47 }
 0x3a1   :  { %1332 = vmatprep.subr.bf16.mxu1 %v1443_v2 }
 0x3a3   :  { %1274 = vmatmul.mubr.msk.f32.vlgmr.msra.gmra.mrb[4].mxu1 %vm135_vm4, %v147_v40 }
 0x3a4   :  { %1280 = vmatprep.mubr.msk.f32.mxu1 %vm1444_vm2, %v1445_v4 }
 0x476   :  { %v1275_v46 = vpop.f32.mrb[4].mxu1 }
 0x477   :  { %v452_v48 = vpop.f32.mrb[5].mxu1  ;;  %v464_v49 = vsel %vm275_vm9, %v1275_v46, 0.0 }
 0x478   :  { %465 = vadd.xlane.f32.xlu0 %v464_v49  ;;  %v461_v50 = vsel %vm275_vm9, %v452_v48, 0.0 }
 0x479   :  { %462 = vadd.xlane.f32.xlu1 %v461_v50  ;;  %v153_v50 = vld [vmem:[%s1797_s8] sm:$0xff]  ;;  %s1449_s8 = smov [#allocation4]  }
 0x505   :  { %v466_v51 = vpop.xlane.xlu0 %465 }
 0x506   :  { %v468_v52 = vmul.f32 0.125, %v466_v51  ;;  %v463_v53 = vpop.xlane.xlu1 %462 }
 0x507   :  { %v467_v54 = vmul.f32 0.125, %v463_v53 }
 0x508   :  { %v470_v55 = vsub.f32 %v1275_v46, %v468_v52 }
 0x509   :  { %v469_v56 = vsub.f32 %v452_v48, %v467_v54 }
 0x50a   :  { %v472_v57 = vmul.f32 %v470_v55, %v470_v55 }
 0x50b   :  { %v471_v58 = vmul.f32 %v469_v56, %v469_v56 }
 0x50c   :  { %v476_v59 = vsel %vm275_vm9, %v472_v57, 0.0 }
 0x50d   :  { %477 = vadd.xlane.f32.xlu1 %v476_v59  ;;  %v473_v60 = vsel %vm275_vm9, %v471_v58, 0.0  ;;  %v155_v58 = vld [vmem:[%s1799_s10] sm:$0xf]  ;;  %s1154_s10 = sshll.u32 %s1449_s8, 4  ;;  %s1155_s10 = int_to_ptr.vmem [resolvable:$true] %s1154_s10 }
 0x50e   :  { %474 = vadd.xlane.f32.xlu0 %v473_v60  ;;  %s1373_s18 = scalar_lea.vmem %s1155_s10, 128  ;;  %p1378_p1 = scmp.lt.s32.totalorder %s1155_s10, %s1155_s10 }
 0x50f   :  { %p1374_p0 = scmp.ne.s32.totalorder %s1155_s10, %s1373_s18  ;;  %p1379_p2 = scmp.lt.s32.totalorder %s1373_s18, %s1373_s18 }
 0x511   :  { %p1380_p3 = por %p1379_p2, %p1378_p1 }
 0x513   :  { %p1381_p4 = pnand %p1380_p3, %p1374_p0 }
 0x59a   :  { %v478_v61 = vpop.xlane.xlu1 %477 }
 0x59b   :  { %v480_v62 = vmul.f32 0.125, %v478_v61  ;;  %v475_v63 = vpop.xlane.xlu0 %474 }
 0x59c   :  { %v479_v0 = vmul.f32 0.125, %v475_v63 }
 0x59d   :  { %v482_v1 = vadd.f32 1e-05, %v480_v62 }
 0x59e   :  { %v481_v3 = vadd.f32 1e-05, %v479_v0 }
 0x59f   :  { %1363 = vrsqrt.f32 %v482_v1 }
 0x5a0   :  { %1365 = vrsqrt.f32 %v481_v3 }
 0x5a9   :  { %v1364_v7 = vpop.eup %1363 }
 0x5aa   :  { %v1366_v8 = vpop.eup %1365  ;;  %v486_v9 = vmul.f32 %v1364_v7, %v149_v5 }
 0x5ab   :  { %v485_v14 = vmul.f32 %v1366_v8, %v148_v6 }
 0x5ac   :  { %494 = vperm.xlu1 %1354, %v486_v9  }
 0x5ad   :  { %489 = vperm.xlu0 %1353, %v485_v14   ;;  %v1448_v14 = vmov 1.0  }
 0x5b0   :  { %501 = vperm.xlu1 %1354, %v150_v15  }
 0x5b1   :  { %506 = vperm.xlu0 %1353, %v151_v17  }
 0x62b   :  { %v495_v18 = vpop.permute.xlu1 %494 }
 0x62c   :  { %v490_v19 = vpop.permute.xlu0 %489  ;;  %v498_v21 = vmul.f32 %v495_v18, %v470_v55 }
 0x62d   :  { %v497_v20 = vmul.f32 %v490_v19, %v469_v56 }
 0x62f   :  { %v502_v22 = vpop.permute.xlu1 %501 }
 0x630   :  { %v509_v23 = vadd.f32 %v502_v22, %v497_v20  ;;  %v507_v24 = vpop.permute.xlu0 %506 }
 0x631   :  { %v510_v25 = vadd.f32 %v507_v24, %v498_v21 }
 0x632   :  { %v511_v26 = vmax.f32 %v509_v23, 0.0 }
 0x633   :  { %v512_v27 = vmax.f32 %v510_v25, 0.0 }
 0x635   :  { %v1333_v28 = vpack.c.bf16 %v512_v27, %v511_v26 }
 0x637   :  { %1334 = vmatpush3.bf16.msra.mxu1 %v1333_v28 }
 0x638   :  { %1335 = vmatprep.subr.bf16.mxu1 %v1443_v2 }
 0x63a   :  { %1281 = vmatmul.mubr.msk.f32.vlgmr.msra.gmra.mrb[6].mxu1 %vm49_vm0, %v152_v30 }
 0x63b   :  { %1296 = vmatprep.mubr.msk.f32.mxu1 %vm1444_vm2, %v1445_v4  ;;  %1337 = vmatpush3.bf16.msk.msra.mxu1 %vm1336_vm11, %v1447_v29 }
 0x63c   :  { %1338 = vmatprep.subr.bf16.mxu1 %v1443_v2 }
 0x63f   :  { %1340 = vmatpush3.bf16.msk.msra.mxu1 %vm1575_vm8, %v1447_v29 }
 0x640   :  { %1311 = vmatprep.subr.mxu1 %v1445_v4 }
 0x70d   :  { %v582_v35 = vpop.f32.mrb[6].mxu1 }
 0x70e   :  { %v1282_v36 = vpop.f32.mrb[7].mxu1  ;;  %v586_v33 = vsel %vm275_vm9, %v582_v35, 0.0 }
 0x70f   :  { %587 = vadd.xlane.f32.xlu1 %v586_v33 }
 0x720   :  { %607 = vperm.xlu1 %1354, %v154_v37  }
 0x79c   :  { %v588_v38 = vpop.xlane.xlu1 %587 }
 0x79d   :  { %v589_v39 = vmul.f32 0.125, %v588_v38 }
 0x79f   :  { %v590_v42 = vsub.f32 %v582_v35, %v589_v39 }
 0x7a0   :  { %v608_v55 = vpop.permute.xlu1 %607 }
 0x7a1   :  { %v591_v47 = vmul.f32 %v590_v42, %v590_v42 }
 0x7a3   :  { %v592_v40 = vsel %vm275_vm9, %v591_v47, 0.0 }
 0x7a4   :  { %593 = vadd.xlane.f32.xlu0 %v592_v40 }
 0x831   :  { %v594_v46 = vpop.xlane.xlu0 %593 }
 0x832   :  { %v595_v48 = vmul.f32 0.125, %v594_v46 }
 0x834   :  { %v596_v49 = vadd.f32 1e-05, %v595_v48 }
 0x836   :  { %1367 = vrsqrt.f32 %v596_v49 }
 0x840   :  { %v1368_v51 = vpop.eup %1367 }
 0x841   :  { %v598_v52 = vmul.f32 %v1368_v51, %v153_v50 }
 0x843   :  { %601 = vperm.xlu0 %1353, %v598_v52  }
 0x8c2   :  { %v602_v53 = vpop.permute.xlu0 %601 }
 0x8c3   :  { %v604_v54 = vmul.f32 %v602_v53, %v590_v42 }
 0x8c5   :  { %v610_v56 = vadd.f32 %v608_v55, %v604_v54 }
 0x8c7   :  { %v611_v57 = vmax.f32 %v610_v56, 0.0 }
 0x8c9   :  { %1284 = vmatpush3.msra.mxu0 %v611_v57 }
 0x8ca   :  { %1286 = vmatmul.mubr.msk.f32.vlgmr.msra.gmra.mrb[2].mxu0 %vm275_vm9, %v155_v58  ;;  %1341 = vmatprep.subr.bf16.mxu0 %v1443_v2 }
 0x8cb   :  { %1303 = vmatprep.mubr.msk.f32.mxu0 %vm1444_vm2, %v1445_v4  ;;  %1343 = vmatpush3.bf16.msk.msra.mxu0 %vm1336_vm11, %v1447_v29 }
 0x8cc   :  { %1306 = vmatprep.subr.mxu0 %v1445_v4 }
 0x99d   :  { %v681_v59 = vpop.f32.mrb[2].mxu0 }
 0x99e   :  { %v686_v60 = vsel %vm685_vm10, %v681_v59, 0.0  ;;  %v1287_v61 = vpop.f32.mrb[3].mxu0 }
 0x99f   :  { %687 = vadd.xlane.f32.xlu1 %v686_v60 }
 0x9d2   :  { %710 = vxpose.xlu1.b32.start [1/4] (short) (narrow) %v376_v32, 8 }
 0x9d6   :  { %711 = vxpose.xlu1.b32.cont [2/4] (short) (narrow) %v377_v34, 8 }
 0x9da   :  { %712 = vxpose.xlu1.b32.cont [3/4] (short) (narrow) %v378_v44, 8 }
 0x9de   :  { %713 = vxpose.xlu1.b32.end [4/4] (short) (narrow) %v379_v45, 8 }
 0xa2c   :  { %v688_v62 = vpop.xlane.xlu1 %687 }
 0xa2d   :  { %v689_v63 = vmul.f32 0.125, %v688_v62 }
 0xa2f   :  { %v690_v0 = vsub.f32 %v681_v59, %v689_v63 }
 0xa31   :  { %v691_v1 = vmul.f32 %v690_v0, %v690_v0 }
 0xa33   :  { %v692_v3 = vsel %vm685_vm10, %v691_v1, 0.0 }
 0xa34   :  { %693 = vadd.xlane.f32.xlu0 %v692_v3 }
 0xa52   :  { %v726_v31 = vpop.trf.xlu1 }
 0xa53   :  { %1297 = vmatmul.mubr.msk.f32.vlgmr.msra.gmra.mrb[8].mxu1 %vm135_vm4, %v726_v31 }
 0xa54   :  { %1312 = vmatpush3.msk.msra.mxu1 %vm1064_vm12, %v1565_v13  ;;  %1313 = vmatprep.mubr.msk.f32.mxu1 %vm1444_vm2, %v1445_v4 }
 0xa61   :  { %816 = vxpose.xlu0.b32.start [1/2] (short) (narrow) %v511_v26, 8 }
 0xa65   :  { %817 = vxpose.xlu0.b32.end [2/2] (short) (narrow) %v512_v27, 8 }
 0xa69   :  { %922 = vxpose.xlu0.b32.start.end [1/1] (short) (narrow) %v611_v57, 8 }
 0xac1   :  { %v694_v12 = vpop.xlane.xlu0 %693 }
 0xac2   :  { %v695_v32 = vmul.f32 0.125, %v694_v12 }
 0xac4   :  { %v696_v34 = vadd.f32 1e-05, %v695_v32 }
 0xac6   :  { %1369 = vrsqrt.f32 %v696_v34 }
 0xad0   :  { %v1370_v2 = vpop.eup %1369 }
 0xad1   :  { %v698_v41 = vmul.f32 %v1370_v2, %v690_v0 }
 0xad3   :  { %v699_v43 = vmul.f32 %v698_v41, %v698_v41 }
 0xad5   :  { %v700_v16 = vsel %vm685_vm10, %v699_v43, 0.0 }
 0xad6   :  { %v701_v44 = vrot.slane %v700_v16, 4 }
 0xad8   :  { %v702_v45 = vadd.f32 %v701_v44, %v700_v16 }
 0xada   :  { %v703_v5 = vrot.slane %v702_v45, 2 }
 0xadc   :  { %v704_v6 = vadd.f32 %v703_v5, %v702_v45 }
 0xade   :  { %v705_v7 = vrot.slane %v704_v6, 1 }
 0xae0   :  { %v706_v8 = vadd.f32 %v705_v7, %v704_v6 }
 0xae1   :  { %v832_v9 = vpop.trf.xlu0 }
 0xae2   :  { %v707_v13 = vmax.f32 %v706_v8, 1e-24  ;;  %1304 = vmatmul.mubr.msk.f32.vlgmr.msra.gmra.mrb[4].mxu0 %vm49_vm0, %v832_v9 }
 0xae3   :  { %1307 = vmatpush3.msk.msra.mxu0 %vm163_vm3, %v1448_v14  ;;  %1308 = vmatprep.mubr.msk.f32.mxu0 %vm1444_vm2, %v1445_v4 }
 0xae4   :  { %1371 = vrsqrt.f32 %v707_v13 }
 0xae9   :  { %v938_v15 = vpop.trf.xlu0 }
 0xaea   :  { %1309 = vmatmul.mubr.msk.f32.vlgmr.msra.gmra.mrb[6].mxu0 %vm275_vm9, %v938_v15 }
 0xaee   :  { %v1372_v17 = vpop.eup %1371 }
 0xaef   :  { %v709_v18 = vmul.f32 %v1372_v17, %v698_v41 }
 0xaf1   :  { %1028 = vxpose.xlu0.b32.start.end [1/1] (short) (narrow) %v709_v18, 8 }
 0xb26   :  { %v811_v19 = vpop.f32.mrb[8].mxu1 }
 0xb27   :  { %815 = vst.msk [vmem:[#allocation2] sm:$0xff] %vm135_vm4, %v811_v19  ;;  %v1298_v20 = vpop.f32.mrb[9].mxu1 }
 0xb71   :  { %v1044_v21 = vpop.trf.xlu0 }
 0xb72   :  { %1314 = vmatmul.mubr.msk.f32.vlgmr.msra.gmra.mrb[10].mxu1 %vm1060_vm13, %v1044_v21 }
 0xbb5   :  { %v917_v10 = vpop.f32.mrb[4].mxu0 }
 0xbb6   :  { %921 = vst.msk [vmem:[#allocation4] sm:$0xff] %vm49_vm0, %v917_v10  ;;  %v1305_v11 = vpop.f32.mrb[5].mxu0 }
 0xbbd   :  { %v1023_v4 = vpop.f32.mrb[6].mxu0 }
 0xbbe   :  { %1027 = vst.msk [vmem:[#allocation6] sm:$0xff] %vm275_vm9, %v1023_v4  ;;  %v1310_v22 = vpop.f32.mrb[7].mxu0 }
 0xbbf   :  { %1384 = shalt.err (!%p1381_p4)
}
 0xbc0   :  { %s1385_s21 = scalar_lea.hbm %s1801_s12, 128 }
 0xbc1   :  { %p1386_p5 = scmp.ne.s32.totalorder %s1801_s12, %s1385_s21  ;;  %p1389_p6 = scmp.lt.u32.totalorder %s1385_s21, %s1801_s12 }
 0xbc3   :  { %p1391_p7 = pnand %p1389_p6, %p1386_p5 }
 0xbc5   :  { %1394 = shalt.err (!%p1391_p7)
}
 0xbc6   :  { %1157 = dma.vmem_to_hbm [thread:$0]  %s1155_s10, 128, %s1801_s12, [#allocation5]  }
 0xbc7   :  { %s1395_s23 = scalar_lea.vmem %s1145_s17, 128  ;;  %p1400_p9 = scmp.lt.s32.totalorder %s1145_s17, %s1145_s17 }
 0xbc8   :  { %p1396_p8 = scmp.ne.s32.totalorder %s1145_s17, %s1395_s23  ;;  %p1401_p10 = scmp.lt.s32.totalorder %s1395_s23, %s1395_s23 }
 0xbca   :  { %p1402_p11 = por %p1401_p10, %p1400_p9 }
 0xbcc   :  { %p1403_p12 = pnand %p1402_p11, %p1396_p8 }
 0xbce   :  { %1406 = shalt.err (!%p1403_p12)
}
 0xbcf   :  { %s1407_s26 = scalar_lea.hbm %s1800_s11, 128 }
 0xbd0   :  { %p1408_p13 = scmp.ne.s32.totalorder %s1800_s11, %s1407_s26  ;;  %p1411_p0 = scmp.lt.u32.totalorder %s1407_s26, %s1800_s11 }
 0xbd2   :  { %p1413_p1 = pnand %p1411_p0, %p1408_p13 }
 0xbd4   :  { %1416 = shalt.err (!%p1413_p1)
}
 0xbd5   :  { %1147 = dma.vmem_to_hbm [thread:$0]  %s1145_s17, 128, %s1800_s11, [#allocation3]  }
 0xbd6   :  { %s1451_s7 = smov [#allocation6]  }
 0xbd7   :  { %s1164_s30 = sshll.u32 %s1451_s7, 4  ;;  %s1165_s30 = int_to_ptr.vmem [resolvable:$true] %s1164_s30 }
 0xbd8   :  { %s1417_s9 = scalar_lea.vmem %s1165_s30, 128  ;;  %p1422_p3 = scmp.lt.s32.totalorder %s1165_s30, %s1165_s30 }
 0xbd9   :  { %p1418_p2 = scmp.ne.s32.totalorder %s1165_s30, %s1417_s9  ;;  %p1423_p4 = scmp.lt.s32.totalorder %s1417_s9, %s1417_s9 }
 0xbdb   :  { %p1424_p5 = por %p1423_p4, %p1422_p3 }
 0xbdd   :  { %p1425_p6 = pnand %p1424_p5, %p1418_p2 }
 0xbdf   :  { %1428 = shalt.err (!%p1425_p6)
}
 0xbe0   :  { %s1429_s10 = scalar_lea.hbm %s1802_s13, 128 }
 0xbe1   :  { %p1430_p7 = scmp.ne.s32.totalorder %s1802_s13, %s1429_s10  ;;  %p1433_p8 = scmp.lt.u32.totalorder %s1429_s10, %s1802_s13 }
 0xbe3   :  { %p1435_p9 = pnand %p1433_p8, %p1430_p7 }
 0xbe5   :  { %1438 = shalt.err (!%p1435_p9)
}
 0xbe6   :  { %1167 = dma.vmem_to_hbm [thread:$0]  %s1165_s30, 128, %s1802_s13, [#allocation5]  }
 0xc45   :  { %v1133_v23 = vpop.f32.mrb[10].mxu1 }
 0xc46   :  { %1137 = vst.msk [vmem:[%s1803_s14] sm:$0xff] %vm1060_vm13, %v1133_v23  ;;  %v1315_v24 = vpop.f32.mrb[11].mxu1 }
 0xc47   :  { %1439 = dma.done.wait [#allocation3], 128  }
 0xc48   :  { %1440 = vsyncadd [#allocation3], 4294967168 }
 0xc49   :  { %1441 = dma.done.wait [#allocation5], 256  }
 0xc4a   :  { %1442 = vsyncadd [#allocation5], 4294967040 }
 0xc4b   :  { %1181 = vsyncpa [#allocation3], 1 }
 0xc4c   :  { %1182 = vsyncpa [#allocation5], 1 }

</bundles_post_ra>
